<compile_context>
chip_gen: v7x
topology: tpu7x:2x2x1
jax: 0.10.0
libtpu: 0.0.40
codegen_flags: <defaults>
</compile_context>

<pallas_src>
import functools

import jax
import jax.numpy as jnp
from jax.experimental import pallas as pl
from jax.experimental.pallas import tpu as pltpu

EPS = 1e-5  # torch.nn.LayerNorm default


# ---------------------------------------------------------------------------
# helpers (pure jnp; used both inside the kernel and by the f32 reference)
# ---------------------------------------------------------------------------
def _layernorm(x, g, b):
    mu = jnp.mean(x, axis=-1, keepdims=True)
    var = jnp.mean(jnp.square(x - mu), axis=-1, keepdims=True)
    return (x - mu) * jax.lax.rsqrt(var + EPS) * g + b


# ---------------------------------------------------------------------------
# Pallas kernel: one grid step = `batch_tile` batch elements (fully fused block)
# ---------------------------------------------------------------------------
def attention_kernel(x_ref, g_ref, b_ref, wq_ref, wk_ref, wv_ref, wo_ref, o_ref,
                     *, heads, dim_head):
    tb, n, d = x_ref.shape
    m = tb * n

    # Merge (batch_tile, N) -> M rows so the LN / QKV / out-proj matmuls fill the MXU.
    x = x_ref[...].reshape(m, d).astype(jnp.float32)
    xn = _layernorm(x, g_ref[...], b_ref[...])            # f32 statistics

    mxu_dt = wq_ref.dtype                                 # bf16 by default (f32 allowed)
    xn_m = xn.astype(mxu_dt)

    # QKV projection (scale already folded into wq by the wrapper).
    q = jnp.dot(xn_m, wq_ref[...], preferred_element_type=jnp.float32)   # (m, inner)
    k = jnp.dot(xn_m, wk_ref[...], preferred_element_type=jnp.float32)
    v = jnp.dot(xn_m, wv_ref[...], preferred_element_type=jnp.float32)

    # Per-head attention, batched over the batch-tile axis via 3-D einsum matmuls.
    # TODO(synk): for long sequences (N >> 512) switch this to flash-style KV tiling
    # with online softmax instead of materializing the (tb, N, N) score matrix.
    head_outs = []
    for h in range(heads):
        lo = h * dim_head
        qh = q[:, lo:lo + dim_head].reshape(tb, n, dim_head).astype(mxu_dt)
        kh = k[:, lo:lo + dim_head].reshape(tb, n, dim_head).astype(mxu_dt)
        vh = v[:, lo:lo + dim_head].reshape(tb, n, dim_head).astype(mxu_dt)

        s = jnp.einsum('bqd,bkd->bqk', qh, kh,
                       preferred_element_type=jnp.float32)               # (tb, n, n)
        s = s - jnp.max(s, axis=-1, keepdims=True)
        p = jnp.exp(s)
        p = p * pl.reciprocal(jnp.sum(p, axis=-1, keepdims=True), approx=True)
        oh = jnp.einsum('bqk,bkd->bqd', p.astype(mxu_dt), vh,
                        preferred_element_type=jnp.float32)              # (tb, n, dh)
        head_outs.append(oh.reshape(m, dim_head))

    # Single output projection over the concatenated heads (K = heads*dim_head).
    o_cat = jnp.concatenate(head_outs, axis=-1).astype(mxu_dt)           # (m, inner)
    out = jnp.dot(o_cat, wo_ref[...], preferred_element_type=jnp.float32)  # (m, d)
    o_ref[...] = out.reshape(tb, n, d).astype(o_ref.dtype)


# ---------------------------------------------------------------------------
# wrappers
# ---------------------------------------------------------------------------
def _pick_batch_tile(batch, seq):
    """Rows per grid step should roughly fill the MXU (target <=512 rows); prefer
    >=2 grid steps (feeds both v7x TensorCores) only when each step keeps >=128 rows."""
    divisors = [d for d in range(1, batch + 1) if batch % d == 0]
    tile = 1
    for d in divisors:
        if d == 1 or d * seq <= 512:
            tile = d
    if batch // tile < 2:
        smaller = [d for d in divisors if d < tile and d * seq >= 128]
        if smaller:
            tile = max(smaller)
    return tile


def prepare_attention_params(wqkv, wout, gamma, beta, *, heads, dim_head,
                             mxu_dtype=jnp.bfloat16):
    """Fold the softmax scale into Wq, split Wqkv, cast matmul weights to the MXU dtype."""
    dim = wqkv.shape[0]
    inner = heads * dim_head
    assert wqkv.shape == (dim, 3 * inner) and wout.shape == (inner, dim)
    scale = dim_head ** -0.5
    return {
        "ln_g": jnp.asarray(gamma, jnp.float32).reshape(1, dim),
        "ln_b": jnp.asarray(beta, jnp.float32).reshape(1, dim),
        "wq": (wqkv[:, :inner] * scale).astype(mxu_dtype),
        "wk": wqkv[:, inner:2 * inner].astype(mxu_dtype),
        "wv": wqkv[:, 2 * inner:].astype(mxu_dtype),
        "wo": wout.astype(mxu_dtype),
    }


def attention_forward(x, params, *, heads, dim_head, batch_tile=None):
    B, N, D = x.shape
    inner = heads * dim_head
    g, b = params["ln_g"], params["ln_b"]
    wq, wk, wv, wo = params["wq"], params["wk"], params["wv"], params["wo"]
    assert wq.shape == (D, inner) and wo.shape == (inner, D)

    tb = batch_tile if batch_tile is not None else _pick_batch_tile(B, N)
    assert B % tb == 0

    kern = functools.partial(attention_kernel, heads=heads, dim_head=dim_head)

    def const_spec(shape):
        # Constant-index (weight) blocks: resident across the whole grid.
        # TODO(synk): at real ViT sizes on v7x, use pipeline_mode=pl.Buffered(1) here
        # and add a K-axis grid over `inner` so weight tiles stream within 64 MiB VMEM.
        return pl.BlockSpec(shape, lambda i: (0,) * len(shape))

    return pl.pallas_call(
        kern,
        out_shape=jax.ShapeDtypeStruct((B, N, D), x.dtype),
        grid=(B // tb,),
        in_specs=[
            pl.BlockSpec((tb, N, D), lambda i: (i, 0, 0)),   # activations
            const_spec(g.shape), const_spec(b.shape),        # LN params (f32)
            const_spec(wq.shape), const_spec(wk.shape),      # weights (bf16)
            const_spec(wv.shape), const_spec(wo.shape),
        ],
        out_specs=pl.BlockSpec((tb, N, D), lambda i: (i, 0, 0)),  # lane-dense (D mult of 128 in demo)
        compiler_params=pltpu.CompilerParams(
            dimension_semantics=("parallel",),
            vmem_limit_bytes=64 * 1024 * 1024,
        ),
    )(x, g, b, wq, wk, wv, wo)


# ---------------------------------------------------------------------------
# pure-JAX f32 reference (same prepared weights) for self-validation
# ---------------------------------------------------------------------------
def attention_reference(x, params, *, heads, dim_head):
    B, N, D = x.shape
    inner = heads * dim_head
    g, b = params["ln_g"], params["ln_b"]
    wq = params["wq"].astype(jnp.float32)
    wk = params["wk"].astype(jnp.float32)
    wv = params["wv"].astype(jnp.float32)
    wo = params["wo"].astype(jnp.float32)

    xn = _layernorm(x.astype(jnp.float32), g, b)
    q = jnp.einsum('bnd,df->bnf', xn, wq).reshape(B, N, heads, dim_head).transpose(0, 2, 1, 3)
    k = jnp.einsum('bnd,df->bnf', xn, wk).reshape(B, N, heads, dim_head).transpose(0, 2, 1, 3)
    v = jnp.einsum('bnd,df->bnf', xn, wv).reshape(B, N, heads, dim_head).transpose(0, 2, 1, 3)
    s = jnp.einsum('bhqd,bhkd->bhqk', q, k)          # scale already folded into wq
    p = jax.nn.softmax(s, axis=-1)
    o = jnp.einsum('bhqk,bhkd->bhqd', p, v).transpose(0, 2, 1, 3).reshape(B, N, inner)
    return jnp.einsum('bnf,fd->bnd', o, wo)


# ---------------------------------------------------------------------------
# demo
# ---------------------------------------------------------------------------
if __name__ == "__main__":
    # small config: dim=128 (lane-dense output), heads=2, dim_head=64 -> inner=128
    B, N, dim = 2, 8, 128
    heads, dim_head = 2, 64
    inner = heads * dim_head

    key = jax.random.PRNGKey(0)
    kx, kq, ko, kg, kb = jax.random.split(key, 5)
    x = jax.random.normal(kx, (B, N, dim), dtype=jnp.float32)
    wqkv = (0.05 * jax.random.normal(kq, (dim, 3 * inner))).astype(jnp.float32)
    wout = (0.05 * jax.random.normal(ko, (inner, dim))).astype(jnp.float32)
    gamma = (1.0 + 0.1 * jax.random.normal(kg, (1, dim))).astype(jnp.float32)
    beta = (0.1 * jax.random.normal(kb, (1, dim))).astype(jnp.float32)

    params = prepare_attention_params(wqkv, wout, gamma, beta,
                                      heads=heads, dim_head=dim_head)

    out = attention_forward(x, params, heads=heads, dim_head=dim_head)
    out = jax.block_until_ready(out)
    assert out.shape == (B, N, dim) and out.dtype == jnp.float32

    ref = jax.block_until_ready(
        attention_reference(x, params, heads=heads, dim_head=dim_head))
    max_err = float(jnp.max(jnp.abs(out - ref)))
    assert max_err < 3e-2, f"kernel mismatch vs reference, max abs err = {max_err}"

    print("KERNEL_OK")
</pallas_src>

<mosaic_0001>
module attributes {stable_mosaic.version = 11 : i64} {
  func.func @attention_kernel(%arg0: i32, %arg1: memref<2x8x128xf32, #tpu.memory_space<vmem>>, %arg2: memref<1x128xf32, #tpu.memory_space<vmem>>, %arg3: memref<1x128xf32, #tpu.memory_space<vmem>>, %arg4: memref<128x128xbf16, #tpu.memory_space<vmem>>, %arg5: memref<128x128xbf16, #tpu.memory_space<vmem>>, %arg6: memref<128x128xbf16, #tpu.memory_space<vmem>>, %arg7: memref<128x128xbf16, #tpu.memory_space<vmem>>, %arg8: memref<2x8x128xf32, #tpu.memory_space<vmem>>) attributes {dimension_semantics = [#tpu.dimension_semantics<parallel>], iteration_bounds = array<i64: 1>, scalar_prefetch = 0 : i64, scratch_operands = 0 : i64, tpu.core_type = #tpu.core_type<tc>, window_params = [{transform_indices = @transform_0, window_bounds = array<i64: 2, 8, 128>}, {pipeline_mode = #tpu.pipeline_mode<synchronous>, transform_indices = @transform_1, window_bounds = array<i64: 1, 128>}, {pipeline_mode = #tpu.pipeline_mode<synchronous>, transform_indices = @transform_2, window_bounds = array<i64: 1, 128>}, {pipeline_mode = #tpu.pipeline_mode<synchronous>, transform_indices = @transform_3, window_bounds = array<i64: 128, 128>}, {pipeline_mode = #tpu.pipeline_mode<synchronous>, transform_indices = @transform_4, window_bounds = array<i64: 128, 128>}, {pipeline_mode = #tpu.pipeline_mode<synchronous>, transform_indices = @transform_5, window_bounds = array<i64: 128, 128>}, {pipeline_mode = #tpu.pipeline_mode<synchronous>, transform_indices = @transform_6, window_bounds = array<i64: 128, 128>}, {transform_indices = @transform_7, window_bounds = array<i64: 2, 8, 128>}]} {
    %c0 = arith.constant 0 : index
    %c0_0 = arith.constant 0 : index
    %c0_1 = arith.constant 0 : index
    %0 = vector.load %arg1[%c0, %c0_0, %c0_1] : memref<2x8x128xf32, #tpu.memory_space<vmem>>, vector<2x8x128xf32>
    %1 = vector.shape_cast %0 : vector<2x8x128xf32> to vector<16x128xf32>
    %c0_2 = arith.constant 0 : index
    %c0_3 = arith.constant 0 : index
    %2 = vector.load %arg2[%c0_2, %c0_3] : memref<1x128xf32, #tpu.memory_space<vmem>>, vector<1x128xf32>
    %c0_4 = arith.constant 0 : index
    %c0_5 = arith.constant 0 : index
    %3 = vector.load %arg3[%c0_4, %c0_5] : memref<1x128xf32, #tpu.memory_space<vmem>>, vector<1x128xf32>
    %cst = arith.constant dense<0.000000e+00> : vector<16xf32>
    %4 = vector.multi_reduction <add>, %1, %cst [1] : vector<16x128xf32> to vector<16xf32>
    %5 = vector.shape_cast %4 : vector<16xf32> to vector<16x1xf32>
    %cst_6 = arith.constant 1.280000e+02 : f32
    %6 = vector.broadcast %cst_6 : f32 to vector<16x1xf32>
    %7 = arith.divf %5, %6 : vector<16x1xf32>
    %8 = vector.broadcast %7 : vector<16x1xf32> to vector<16x128xf32>
    %9 = arith.subf %1, %8 : vector<16x128xf32>
    %10 = arith.mulf %9, %9 : vector<16x128xf32>
    %cst_7 = arith.constant dense<0.000000e+00> : vector<16xf32>
    %11 = vector.multi_reduction <add>, %10, %cst_7 [1] : vector<16x128xf32> to vector<16xf32>
    %12 = vector.shape_cast %11 : vector<16xf32> to vector<16x1xf32>
    %cst_8 = arith.constant 1.280000e+02 : f32
    %13 = vector.broadcast %cst_8 : f32 to vector<16x1xf32>
    %14 = arith.divf %12, %13 : vector<16x1xf32>
    %15 = vector.broadcast %7 : vector<16x1xf32> to vector<16x128xf32>
    %16 = arith.subf %1, %15 : vector<16x128xf32>
    %cst_9 = arith.constant 9.99999974E-6 : f32
    %17 = vector.broadcast %cst_9 : f32 to vector<16x1xf32>
    %18 = arith.addf %14, %17 : vector<16x1xf32>
    %19 = math.rsqrt %18 : vector<16x1xf32>
    %20 = vector.broadcast %19 : vector<16x1xf32> to vector<16x128xf32>
    %21 = arith.mulf %16, %20 : vector<16x128xf32>
    %22 = vector.broadcast %2 : vector<1x128xf32> to vector<16x128xf32>
    %23 = arith.mulf %21, %22 : vector<16x128xf32>
    %24 = vector.broadcast %3 : vector<1x128xf32> to vector<16x128xf32>
    %25 = arith.addf %23, %24 : vector<16x128xf32>
    %26 = arith.truncf %25 : vector<16x128xf32> to vector<16x128xbf16>
    %c0_10 = arith.constant 0 : index
    %c0_11 = arith.constant 0 : index
    %27 = vector.load %arg4[%c0_10, %c0_11] : memref<128x128xbf16, #tpu.memory_space<vmem>>, vector<128x128xbf16>
    %cst_12 = arith.constant dense<0.000000e+00> : vector<16x128xf32>
    %28 = tpu.matmul %26, %27, %cst_12 {dimension_numbers = #tpu.dot_dimension_numbers<[1], [0], [0], [1], [0, 0, 1, 1], [], []>} : vector<16x128xbf16>, vector<128x128xbf16>, vector<16x128xf32> -> vector<16x128xf32>
    %c0_13 = arith.constant 0 : index
    %c0_14 = arith.constant 0 : index
    %29 = vector.load %arg5[%c0_13, %c0_14] : memref<128x128xbf16, #tpu.memory_space<vmem>>, vector<128x128xbf16>
    %cst_15 = arith.constant dense<0.000000e+00> : vector<16x128xf32>
    %30 = tpu.matmul %26, %29, %cst_15 {dimension_numbers = #tpu.dot_dimension_numbers<[1], [0], [0], [1], [0, 0, 1, 1], [], []>} : vector<16x128xbf16>, vector<128x128xbf16>, vector<16x128xf32> -> vector<16x128xf32>
    %c0_16 = arith.constant 0 : index
    %c0_17 = arith.constant 0 : index
    %31 = vector.load %arg6[%c0_16, %c0_17] : memref<128x128xbf16, #tpu.memory_space<vmem>>, vector<128x128xbf16>
    %cst_18 = arith.constant dense<0.000000e+00> : vector<16x128xf32>
    %32 = tpu.matmul %26, %31, %cst_18 {dimension_numbers = #tpu.dot_dimension_numbers<[1], [0], [0], [1], [0, 0, 1, 1], [], []>} : vector<16x128xbf16>, vector<128x128xbf16>, vector<16x128xf32> -> vector<16x128xf32>
    %33 = vector.extract_strided_slice %28 {offsets = [0, 0], sizes = [16, 64], strides = [1, 1]} : vector<16x128xf32> to vector<16x64xf32>
    %34 = vector.shape_cast %33 : vector<16x64xf32> to vector<2x8x64xf32>
    %35 = arith.truncf %34 : vector<2x8x64xf32> to vector<2x8x64xbf16>
    %36 = vector.extract_strided_slice %30 {offsets = [0, 0], sizes = [16, 64], strides = [1, 1]} : vector<16x128xf32> to vector<16x64xf32>
    %37 = vector.shape_cast %36 : vector<16x64xf32> to vector<2x8x64xf32>
    %38 = arith.truncf %37 : vector<2x8x64xf32> to vector<2x8x64xbf16>
    %39 = vector.extract_strided_slice %32 {offsets = [0, 0], sizes = [16, 64], strides = [1, 1]} : vector<16x128xf32> to vector<16x64xf32>
    %40 = vector.shape_cast %39 : vector<16x64xf32> to vector<2x8x64xf32>
    %41 = arith.truncf %40 : vector<2x8x64xf32> to vector<2x8x64xbf16>
    "tpu.trace_start"() <{level = 10 : i32, message = "bqd,bkd->bqk"}> : () -> ()
    %cst_19 = arith.constant dense<0.000000e+00> : vector<2x8x8xf32>
    %42 = tpu.matmul %35, %38, %cst_19 {dimension_numbers = #tpu.dot_dimension_numbers<[2], [2], [1], [1], [0, 0, 0, 1, 1, 1], [0], [0]>} : vector<2x8x64xbf16>, vector<2x8x64xbf16>, vector<2x8x8xf32> -> vector<2x8x8xf32>
    "tpu.trace_stop"() : () -> ()
    %cst_20 = arith.constant dense<0xFF800000> : vector<2x8xf32>
    %43 = vector.multi_reduction <maximumf>, %42, %cst_20 [2] : vector<2x8x8xf32> to vector<2x8xf32>
    %44 = vector.shape_cast %43 : vector<2x8xf32> to vector<2x8x1xf32>
    %45 = vector.broadcast %44 : vector<2x8x1xf32> to vector<2x8x8xf32>
    %46 = arith.subf %42, %45 : vector<2x8x8xf32>
    %47 = math.exp %46 : vector<2x8x8xf32>
    %cst_21 = arith.constant dense<0.000000e+00> : vector<2x8xf32>
    %48 = vector.multi_reduction <add>, %47, %cst_21 [2] : vector<2x8x8xf32> to vector<2x8xf32>
    %49 = vector.shape_cast %48 : vector<2x8xf32> to vector<2x8x1xf32>
    %50 = tpu.reciprocal %49 {approx = true} : vector<2x8x1xf32> -> vector<2x8x1xf32>
    %51 = vector.broadcast %50 : vector<2x8x1xf32> to vector<2x8x8xf32>
    %52 = arith.mulf %47, %51 : vector<2x8x8xf32>
    %53 = arith.truncf %52 : vector<2x8x8xf32> to vector<2x8x8xbf16>
    "tpu.trace_start"() <{level = 10 : i32, message = "bqk,bkd->bqd"}> : () -> ()
    %cst_22 = arith.constant dense<0.000000e+00> : vector<2x8x64xf32>
    %54 = tpu.matmul %53, %41, %cst_22 {dimension_numbers = #tpu.dot_dimension_numbers<[2], [1], [1], [2], [0, 0, 0, 1, 1, 2], [0], [0]>} : vector<2x8x8xbf16>, vector<2x8x64xbf16>, vector<2x8x64xf32> -> vector<2x8x64xf32>
    "tpu.trace_stop"() : () -> ()
    %55 = vector.shape_cast %54 : vector<2x8x64xf32> to vector<16x64xf32>
    %56 = vector.extract_strided_slice %28 {offsets = [0, 64], sizes = [16, 64], strides = [1, 1]} : vector<16x128xf32> to vector<16x64xf32>
    %57 = vector.shape_cast %56 : vector<16x64xf32> to vector<2x8x64xf32>
    %58 = arith.truncf %57 : vector<2x8x64xf32> to vector<2x8x64xbf16>
    %59 = vector.extract_strided_slice %30 {offsets = [0, 64], sizes = [16, 64], strides = [1, 1]} : vector<16x128xf32> to vector<16x64xf32>
    %60 = vector.shape_cast %59 : vector<16x64xf32> to vector<2x8x64xf32>
    %61 = arith.truncf %60 : vector<2x8x64xf32> to vector<2x8x64xbf16>
    %62 = vector.extract_strided_slice %32 {offsets = [0, 64], sizes = [16, 64], strides = [1, 1]} : vector<16x128xf32> to vector<16x64xf32>
    %63 = vector.shape_cast %62 : vector<16x64xf32> to vector<2x8x64xf32>
    %64 = arith.truncf %63 : vector<2x8x64xf32> to vector<2x8x64xbf16>
    "tpu.trace_start"() <{level = 10 : i32, message = "bqd,bkd->bqk"}> : () -> ()
    %cst_23 = arith.constant dense<0.000000e+00> : vector<2x8x8xf32>
    %65 = tpu.matmul %58, %61, %cst_23 {dimension_numbers = #tpu.dot_dimension_numbers<[2], [2], [1], [1], [0, 0, 0, 1, 1, 1], [0], [0]>} : vector<2x8x64xbf16>, vector<2x8x64xbf16>, vector<2x8x8xf32> -> vector<2x8x8xf32>
    "tpu.trace_stop"() : () -> ()
    %cst_24 = arith.constant dense<0xFF800000> : vector<2x8xf32>
    %66 = vector.multi_reduction <maximumf>, %65, %cst_24 [2] : vector<2x8x8xf32> to vector<2x8xf32>
    %67 = vector.shape_cast %66 : vector<2x8xf32> to vector<2x8x1xf32>
    %68 = vector.broadcast %67 : vector<2x8x1xf32> to vector<2x8x8xf32>
    %69 = arith.subf %65, %68 : vector<2x8x8xf32>
    %70 = math.exp %69 : vector<2x8x8xf32>
    %cst_25 = arith.constant dense<0.000000e+00> : vector<2x8xf32>
    %71 = vector.multi_reduction <add>, %70, %cst_25 [2] : vector<2x8x8xf32> to vector<2x8xf32>
    %72 = vector.shape_cast %71 : vector<2x8xf32> to vector<2x8x1xf32>
    %73 = tpu.reciprocal %72 {approx = true} : vector<2x8x1xf32> -> vector<2x8x1xf32>
    %74 = vector.broadcast %73 : vector<2x8x1xf32> to vector<2x8x8xf32>
    %75 = arith.mulf %70, %74 : vector<2x8x8xf32>
    %76 = arith.truncf %75 : vector<2x8x8xf32> to vector<2x8x8xbf16>
    "tpu.trace_start"() <{level = 10 : i32, message = "bqk,bkd->bqd"}> : () -> ()
    %cst_26 = arith.constant dense<0.000000e+00> : vector<2x8x64xf32>
    %77 = tpu.matmul %76, %64, %cst_26 {dimension_numbers = #tpu.dot_dimension_numbers<[2], [1], [1], [2], [0, 0, 0, 1, 1, 2], [0], [0]>} : vector<2x8x8xbf16>, vector<2x8x64xbf16>, vector<2x8x64xf32> -> vector<2x8x64xf32>
    "tpu.trace_stop"() : () -> ()
    %78 = vector.shape_cast %77 : vector<2x8x64xf32> to vector<16x64xf32>
    %79 = tpu.concatenate %55, %78 in 1 : vector<16x64xf32>, vector<16x64xf32> -> vector<16x128xf32>
    %80 = arith.truncf %79 : vector<16x128xf32> to vector<16x128xbf16>
    %c0_27 = arith.constant 0 : index
    %c0_28 = arith.constant 0 : index
    %81 = vector.load %arg7[%c0_27, %c0_28] : memref<128x128xbf16, #tpu.memory_space<vmem>>, vector<128x128xbf16>
    %cst_29 = arith.constant dense<0.000000e+00> : vector<16x128xf32>
    %82 = tpu.matmul %80, %81, %cst_29 {dimension_numbers = #tpu.dot_dimension_numbers<[1], [0], [0], [1], [0, 0, 1, 1], [], []>} : vector<16x128xbf16>, vector<128x128xbf16>, vector<16x128xf32> -> vector<16x128xf32>
    %83 = vector.shape_cast %82 : vector<16x128xf32> to vector<2x8x128xf32>
    %c0_30 = arith.constant 0 : index
    %c0_31 = arith.constant 0 : index
    %c0_32 = arith.constant 0 : index
    %84 = vector.load %arg8[%c0_30, %c0_31, %c0_32] : memref<2x8x128xf32, #tpu.memory_space<vmem>>, vector<2x8x128xf32>
    tpu.vector_store %arg8[%c0_30, %c0_31, %c0_32], %83 {strides = array<i32>} : memref<2x8x128xf32, #tpu.memory_space<vmem>>, vector<2x8x128xf32>,
    return
  }
  func.func @transform_0(%arg0: i32) -> (i32, i32, i32) {
    %c0_i32 = arith.constant 0 : i32
    %c0_i32_0 = arith.constant 0 : i32
    %c0_i32_1 = arith.constant 0 : i32
    return %arg0, %c0_i32, %c0_i32_0 : i32, i32, i32
  }
  func.func @transform_1(%arg0: i32) -> (i32, i32) {
    %c0_i32 = arith.constant 0 : i32
    %c0_i32_0 = arith.constant 0 : i32
    %c0_i32_1 = arith.constant 0 : i32
    return %c0_i32, %c0_i32_0 : i32, i32
  }
  func.func @transform_2(%arg0: i32) -> (i32, i32) {
    %c0_i32 = arith.constant 0 : i32
    %c0_i32_0 = arith.constant 0 : i32
    %c0_i32_1 = arith.constant 0 : i32
    return %c0_i32, %c0_i32_0 : i32, i32
  }
  func.func @transform_3(%arg0: i32) -> (i32, i32) {
    %c0_i32 = arith.constant 0 : i32
    %c0_i32_0 = arith.constant 0 : i32
    %c0_i32_1 = arith.constant 0 : i32
    return %c0_i32, %c0_i32_0 : i32, i32
  }
  func.func @transform_4(%arg0: i32) -> (i32, i32) {
    %c0_i32 = arith.constant 0 : i32
    %c0_i32_0 = arith.constant 0 : i32
    %c0_i32_1 = arith.constant 0 : i32
    return %c0_i32, %c0_i32_0 : i32, i32
  }
  func.func @transform_5(%arg0: i32) -> (i32, i32) {
    %c0_i32 = arith.constant 0 : i32
    %c0_i32_0 = arith.constant 0 : i32
    %c0_i32_1 = arith.constant 0 : i32
    return %c0_i32, %c0_i32_0 : i32, i32
  }
  func.func @transform_6(%arg0: i32) -> (i32, i32) {
    %c0_i32 = arith.constant 0 : i32
    %c0_i32_0 = arith.constant 0 : i32
    %c0_i32_1 = arith.constant 0 : i32
    return %c0_i32, %c0_i32_0 : i32, i32
  }
  func.func @transform_7(%arg0: i32) -> (i32, i32, i32) {
    %c0_i32 = arith.constant 0 : i32
    %c0_i32_0 = arith.constant 0 : i32
    %c0_i32_1 = arith.constant 0 : i32
    return %arg0, %c0_i32, %c0_i32_0 : i32, i32, i32
  }
}

</mosaic_0001>

<bundles_post_ra>
// kernel: tpu_custom_call.1
= control target key start
LH: loop header
LB: loop body
LE: loop exit
PB: predicated region body
PF: predicated region fallthrough
CT: control target
= control target key end

     0   :  { %12 = vsyncpa [#allocation3], 0  ;;  %s1834_s0 = inlined_call_operand.hbm [shape: f32[2,8,128], index: 0, kind: input, shape index: {}]   ;;  %s1835_s1 = inlined_call_operand.hbm [shape: f32[1,128], index: 1, kind: input, shape index: {}]   ;;  %s1836_s2 = inlined_call_operand.hbm [shape: f32[1,128], index: 2, kind: input, shape index: {}]   ;;  %s1837_s3 = inlined_call_operand.hbm [shape: bf16[128,128], index: 3, kind: input, shape index: {}]   ;;  %s1838_s4 = inlined_call_operand.hbm [shape: bf16[128,128], index: 4, kind: input, shape index: {}]   ;;  %s1839_s5 = inlined_call_operand.hbm [shape: bf16[128,128], index: 5, kind: input, shape index: {}]   ;;  %s1840_s6 = inlined_call_operand.hbm [shape: bf16[128,128], index: 6, kind: input, shape index: {}]   ;;  %s1841_s7 = inlined_call_operand.hbm [shape: f32[2,8,128], index: 7, kind: output, shape index: {}]  }
   0x1   :  { %13 = vsyncpa [#allocation6], 0 }
   0x2   :  { %14 = vsyncpa [#allocation9], 0 }
   0x3   :  { %15 = vsyncpa [#allocation12], 0 }
   0x4   :  { %16 = vsyncpa [#allocation4], 0  ;;  %s1538_s24 = smov [#allocation5]   ;;  %s1539_s26 = smov [#allocation8]  }
   0x5   :  { %s35_s25 = sshll.u32 %s1538_s24, 4  ;;  %s54_s27 = sshll.u32 %s1539_s26, 4  ;;  %s36_s25 = int_to_ptr.vmem [resolvable:$true] %s35_s25  ;;  %s1592_s27 = int_to_ptr.vmem [resolvable:$true] %s54_s27 }
   0x6   :  { %s1352_s30 = scalar_lea.hbm %s1835_s1, 16 }
   0x7   :  { %p1353_p0 = scmp.ne.s32.totalorder %s1835_s1, %s1352_s30  ;;  %p1356_p1 = scmp.lt.u32.totalorder %s1352_s30, %s1835_s1 }
   0x9   :  { %p1358_p2 = pnand %p1356_p1, %p1353_p0 }
   0xb   :  { %1361 = shalt.err (!%p1358_p2)
}
   0xc   :  { %s1362_s12 = scalar_lea.vmem %s36_s25, 16  ;;  %s1366_s13 = scalar_lea.vmem %s36_s25, 32 }
   0xd   :  { %p1363_p3 = scmp.ne.s32.totalorder %s36_s25, %s1362_s12  ;;  %p1367_p4 = scmp.lt.s32.totalorder %s36_s25, %s36_s25 }
   0xe   :  { %p1368_p5 = scmp.lt.s32.totalorder %s1366_s13, %s1362_s12 }
  0x10   :  { %p1369_p6 = por %p1368_p5, %p1367_p4 }
  0x12   :  { %p1370_p7 = pnand %p1369_p6, %p1363_p3 }
  0x14   :  { %1373 = shalt.err (!%p1370_p7)
}
  0x15   :  { %38 = dma.hbm_to_vmem [thread:$0]  %s1835_s1, 16, %s36_s25, [#allocation6]  }
  0x16   :  { %s1374_s18 = scalar_lea.hbm %s1837_s3, 1024 }
  0x17   :  { %p1375_p8 = scmp.ne.s32.totalorder %s1837_s3, %s1374_s18  ;;  %p1378_p9 = scmp.lt.u32.totalorder %s1374_s18, %s1837_s3 }
  0x19   :  { %p1380_p10 = pnand %p1378_p9, %p1375_p8 }
  0x1b   :  { %1383 = shalt.err (!%p1380_p10)
}
  0x1c   :  { %s1384_s23 = scalar_lea.vmem %s1592_s27, 1024  ;;  %p1389_p12 = scmp.lt.s32.totalorder %s1592_s27, %s1592_s27 }
  0x1d   :  { %p1385_p11 = scmp.ne.s32.totalorder %s1592_s27, %s1384_s23  ;;  %p1390_p13 = scmp.lt.s32.totalorder %s1384_s23, %s1384_s23 }
  0x1f   :  { %p1391_p0 = por %p1390_p13, %p1389_p12 }
  0x21   :  { %p1392_p1 = pnand %p1391_p0, %p1385_p11 }
  0x23   :  { %1395 = shalt.err (!%p1392_p1)
}
  0x24   :  { %s1540_s1 = smov 64   ;;  %s1541_s24 = smov 4  }
  0x25   :  { %60 = dma.hbm_to_vmem [thread:$0]  %s1837_s3, 1024, %s1592_s27, [#allocation9], %s1540_s1, %s1540_s1, %s1541_s24  }
  0x26   :  { %s1542_s28 = smov [#allocation11]   ;;  %s1543_s30 = smov [#allocation2]  }
  0x27   :  { %s78_s29 = sshll.u32 %s1542_s28, 4  ;;  %s22_s8 = sshll.u32 %s1543_s30, 4  ;;  %s79_s29 = int_to_ptr.vmem [resolvable:$true] %s78_s29  ;;  %s1626_s8 = int_to_ptr.vmem [resolvable:$true] %s22_s8 }
  0x28   :  { %s1396_s11 = scalar_lea.hbm %s1839_s5, 1024 }
  0x29   :  { %p1397_p2 = scmp.ne.s32.totalorder %s1839_s5, %s1396_s11  ;;  %p1400_p3 = scmp.lt.u32.totalorder %s1396_s11, %s1839_s5 }
  0x2b   :  { %p1402_p4 = pnand %p1400_p3, %p1397_p2 }
  0x2d   :  { %1405 = shalt.err (!%p1402_p4)
}
  0x2e   :  { %s1406_s3 = scalar_lea.vmem %s79_s29, 1024  ;;  %p1411_p6 = scmp.lt.s32.totalorder %s79_s29, %s79_s29 }
  0x2f   :  { %p1407_p5 = scmp.ne.s32.totalorder %s79_s29, %s1406_s3  ;;  %p1412_p7 = scmp.lt.s32.totalorder %s1406_s3, %s1406_s3 }
  0x31   :  { %p1413_p8 = por %p1412_p7, %p1411_p6 }
  0x33   :  { %p1414_p9 = pnand %p1413_p8, %p1407_p5 }
  0x35   :  { %1417 = shalt.err (!%p1414_p9)
}
  0x36   :  { %84 = dma.hbm_to_vmem [thread:$0]  %s1839_s5, 1024, %s79_s29, [#allocation12], %s1540_s1, %s1540_s1, %s1541_s24  }
  0x37   :  { %s1418_s19 = scalar_lea.hbm %s1834_s0, 256 }
  0x38   :  { %p1419_p10 = scmp.ne.s32.totalorder %s1834_s0, %s1418_s19  ;;  %p1422_p11 = scmp.lt.u32.totalorder %s1418_s19, %s1834_s0 }
  0x3a   :  { %p1424_p12 = pnand %p1422_p11, %p1419_p10 }
  0x3c   :  { %1427 = shalt.err (!%p1424_p12)
}
  0x3d   :  { %s1428_s25 = scalar_lea.vmem %s1626_s8, 256  ;;  %p1433_p0 = scmp.lt.s32.totalorder %s1626_s8, %s1626_s8 }
  0x3e   :  { %p1429_p13 = scmp.ne.s32.totalorder %s1626_s8, %s1428_s25  ;;  %p1434_p1 = scmp.lt.s32.totalorder %s1428_s25, %s1428_s25 }
  0x40   :  { %p1435_p2 = por %p1434_p1, %p1433_p0 }
  0x42   :  { %p1436_p3 = pnand %p1435_p2, %p1429_p13 }
  0x44   :  { %1439 = shalt.err (!%p1436_p3)
}
  0x45   :  { %s1544_s5 = smov 128   ;;  %s1545_s26 = smov 8  }
  0x46   :  { %28 = dma.hbm_to_vmem [thread:$0]  %s1834_s0, 256, %s1626_s8, [#allocation3], %s1544_s5, %s1544_s5, %s1545_s26  }
  0x47   :  { %s1546_s30 = smov [#allocation7]   ;;  %s1547_s10 = smov [#allocation10]  }
  0x48   :  { %s45_s9 = sshll.u32 %s1546_s30, 4  ;;  %s66_s11 = sshll.u32 %s1547_s10, 4  ;;  %s46_s9 = int_to_ptr.vmem [resolvable:$true] %s45_s9  ;;  %s1663_s11 = int_to_ptr.vmem [resolvable:$true] %s66_s11 }
  0x49   :  { %s1440_s14 = scalar_lea.hbm %s1836_s2, 16 }
  0x4a   :  { %p1441_p4 = scmp.ne.s32.totalorder %s1836_s2, %s1440_s14  ;;  %p1444_p5 = scmp.lt.u32.totalorder %s1440_s14, %s1836_s2 }
  0x4c   :  { %p1446_p6 = pnand %p1444_p5, %p1441_p4 }
  0x4e   :  { %1449 = shalt.err (!%p1446_p6)
}
  0x4f   :  { %s1450_s0 = scalar_lea.vmem %s46_s9, 16  ;;  %s1454_s8 = scalar_lea.vmem %s46_s9, 32 }
  0x50   :  { %p1451_p7 = scmp.ne.s32.totalorder %s46_s9, %s1450_s0  ;;  %p1455_p8 = scmp.lt.s32.totalorder %s46_s9, %s46_s9 }
  0x51   :  { %p1456_p9 = scmp.lt.s32.totalorder %s1454_s8, %s1450_s0 }
  0x53   :  { %p1457_p10 = por %p1456_p9, %p1455_p8 }
  0x55   :  { %p1458_p11 = pnand %p1457_p10, %p1451_p7 }
  0x57   :  { %1461 = shalt.err (!%p1458_p11)
}
  0x58   :  { %48 = dma.hbm_to_vmem [thread:$0]  %s1836_s2, 16, %s46_s9, [#allocation6]  }
  0x59   :  { %s1462_s21 = scalar_lea.hbm %s1838_s4, 1024 }
  0x5a   :  { %p1463_p12 = scmp.ne.s32.totalorder %s1838_s4, %s1462_s21  ;;  %p1466_p13 = scmp.lt.u32.totalorder %s1462_s21, %s1838_s4 }
  0x5c   :  { %p1468_p0 = pnand %p1466_p13, %p1463_p12 }
  0x5e   :  { %1471 = shalt.err (!%p1468_p0)
}
  0x5f   :  { %s1472_s29 = scalar_lea.vmem %s1663_s11, 1024  ;;  %p1477_p2 = scmp.lt.s32.totalorder %s1663_s11, %s1663_s11 }
  0x60   :  { %p1473_p1 = scmp.ne.s32.totalorder %s1663_s11, %s1472_s29  ;;  %p1478_p3 = scmp.lt.s32.totalorder %s1472_s29, %s1472_s29 }
  0x62   :  { %p1479_p4 = por %p1478_p3, %p1477_p2 }
  0x64   :  { %p1480_p5 = pnand %p1479_p4, %p1473_p1 }
  0x66   :  { %1483 = shalt.err (!%p1480_p5)
}
  0x67   :  { %72 = dma.hbm_to_vmem [thread:$0]  %s1838_s4, 1024, %s1663_s11, [#allocation9], %s1540_s1, %s1540_s1, %s1541_s24  }
  0x68   :  { %s1548_s9 = smov [#allocation13]   ;;  %s1484_s14 = scalar_lea.hbm %s1840_s6, 1024 }
  0x69   :  { %s90_s10 = sshll.u32 %s1548_s9, 4  ;;  %p1485_p6 = scmp.ne.s32.totalorder %s1840_s6, %s1484_s14  ;;  %s91_s10 = int_to_ptr.vmem [resolvable:$true] %s90_s10 }
  0x6a   :  { %p1488_p7 = scmp.lt.u32.totalorder %s1484_s14, %s1840_s6 }
  0x6c   :  { %p1490_p8 = pnand %p1488_p7, %p1485_p6 }
  0x6e   :  { %1493 = shalt.err (!%p1490_p8)
}
  0x6f   :  { %s1494_s0 = scalar_lea.vmem %s91_s10, 1024  ;;  %p1499_p10 = scmp.lt.s32.totalorder %s91_s10, %s91_s10 }
  0x70   :  { %p1495_p9 = scmp.ne.s32.totalorder %s91_s10, %s1494_s0  ;;  %p1500_p11 = scmp.lt.s32.totalorder %s1494_s0, %s1494_s0 }
  0x72   :  { %p1501_p12 = por %p1500_p11, %p1499_p10 }
  0x74   :  { %p1502_p13 = pnand %p1501_p12, %p1495_p9 }
  0x76   :  { %1505 = shalt.err (!%p1502_p13)
}
  0x77   :  { %96 = dma.hbm_to_vmem [thread:$0]  %s1840_s6, 1024, %s91_s10, [#allocation12], %s1540_s1, %s1540_s1, %s1541_s24  }
  0x78   :  { %1528 = dma.done.wait [#allocation3], 256  }
  0x79   :  { %1529 = vsyncadd [#allocation3], 4294967040 }
  0x7a   :  { %1530 = dma.done.wait [#allocation6], 32  }
  0x7b   :  { %1531 = vsyncadd [#allocation6], 4294967264 }
  0x7c   :  { %1532 = dma.done.wait [#allocation9], 2048  }
  0x7d   :  { %1533 = vsyncadd [#allocation9], 4294965248 }
  0x7e   :  { %1534 = dma.done.wait [#allocation12], 2048  }
  0x7f   :  { %1535 = vsyncadd [#allocation12], 4294965248  ;;  %v119_v0 = vld [vmem:[#allocation2] sm:$0xff]  ;;  %v120_v1 = vld [vmem:[#allocation2 + $0x8] sm:$0xff]  ;;  %v1549_v4 = vmov 0.0   ;;  %vm1550_vm0 = vmmov 0  }
  0x80   :  { %123 = vadd.xlane.f32.xlu0 %v119_v0  ;;  %v1300_v2 = vld [vmem:[#allocation8] sm:$0xff]   ;;  %1153 = vmatprep.subr.bf16.mxu0 %v1549_v4  ;;  %v1302_v5 = vld [vmem:[#allocation8 + $0x8] sm:$0xff]   ;;  %v1304_v15 = vld [vmem:[#allocation8 + $0x10] sm:$0xff]   ;;  %vm484_vm1 = vcmask 523264   ;;  %vm605_vm2 = vcmask 1043456   ;;  %vm577_vm3 = vcmask 64512  }
  0x81   :  { %v1301_v3 = vld [vmem:[#allocation10] sm:$0xff]   ;;  %1173 = vmatprep.subr.bf16.mxu1 %v1549_v4  ;;  %1154 = vmatpush3.bf16.msra.mxu0 %v1300_v2  ;;  %v1303_v14 = vld [vmem:[#allocation10 + $0x8] sm:$0xff]   ;;  %v1305_v16 = vld [vmem:[#allocation10 + $0x10] sm:$0xff]   ;;  %s1551_s6 = smov [#allocation14]  }
  0x82   :  { %1174 = vmatpush3.bf16.msra.mxu1 %v1301_v3  ;;  %1155 = vmatprep.subr.bf16.mxu0 %v1549_v4  ;;  %v1306_v17 = vld [vmem:[#allocation8 + $0x18] sm:$0xff]   ;;  %v1308_v19 = vld [vmem:[#allocation8 + $0x20] sm:$0xff]   ;;  %v1310_v21 = vld [vmem:[#allocation8 + $0x28] sm:$0xff]   ;;  %s1044_s24 = sshll.u32 %s1551_s6, 4  ;;  %s1045_s24 = int_to_ptr.vmem [resolvable:$true] %s1044_s24 }
  0x83   :  { %1175 = vmatprep.subr.bf16.mxu1 %v1549_v4  ;;  %v1307_v18 = vld [vmem:[#allocation10 + $0x18] sm:$0xff]   ;;  %v1309_v20 = vld [vmem:[#allocation10 + $0x20] sm:$0xff]   ;;  %1169 = vmatprep.mubr.msk.bf16.mxu0 %vm1550_vm0, %v1549_v4  ;;  %v1311_v22 = vld [vmem:[#allocation10 + $0x28] sm:$0xff]   ;;  %p1511_p1 = scmp.lt.s32.totalorder %s1045_s24, %s1045_s24 }
  0x84   :  { %125 = vadd.xlane.f32.xlu0 %v120_v1  ;;  %1189 = vmatprep.mubr.msk.bf16.mxu1 %vm1550_vm0, %v1549_v4  ;;  %v1312_v23 = vld [vmem:[#allocation8 + $0x30] sm:$0xff]   ;;  %v1314_v25 = vld [vmem:[#allocation8 + $0x38] sm:$0xff]   ;;  %v1316_v43 = vld [vmem:[#allocation11] sm:$0xff]  }
  0x85   :  { %1156 = vmatpush3.bf16.msra.mxu0 %v1302_v5  ;;  %v1313_v24 = vld [vmem:[#allocation10 + $0x30] sm:$0xff]   ;;  %v1315_v26 = vld [vmem:[#allocation10 + $0x38] sm:$0xff]   ;;  %v1317_v45 = vld [vmem:[#allocation11 + $0x8] sm:$0xff]  }
  0x86   :  { %1157 = vmatprep.subr.bf16.mxu0 %v1549_v4  ;;  %1176 = vmatpush3.bf16.msra.mxu1 %v1303_v14  ;;  %v1059_v35 = vld [vmem:[#allocation5] ss:$0 sm:$0xff]  ;;  %v1060_v39 = vld [vmem:[#allocation7] ss:$0 sm:$0xff]  ;;  %v1318_v46 = vld [vmem:[#allocation11 + $0x10] sm:$0xff]  }
  0x87   :  { %1177 = vmatprep.subr.bf16.mxu1 %v1549_v4  ;;  %v1319_v47 = vld [vmem:[#allocation11 + $0x18] sm:$0xff]   ;;  %v1320_v48 = vld [vmem:[#allocation11 + $0x20] sm:$0xff]   ;;  %v1321_v49 = vld [vmem:[#allocation11 + $0x28] sm:$0xff]  }
  0x88   :  { %v1322_v50 = vld [vmem:[#allocation11 + $0x30] sm:$0xff]   ;;  %v1323_v51 = vld [vmem:[#allocation11 + $0x38] sm:$0xff]  }
  0x89   :  { %1158 = vmatpush3.bf16.msra.mxu0 %v1304_v15 }
  0x8a   :  { %1178 = vmatpush3.bf16.msra.mxu1 %v1305_v16  ;;  %1159 = vmatprep.subr.bf16.mxu0 %v1549_v4 }
  0x8b   :  { %1179 = vmatprep.subr.bf16.mxu1 %v1549_v4 }
  0x8d   :  { %1160 = vmatpush3.bf16.msra.mxu0 %v1306_v17 }
  0x8e   :  { %1180 = vmatpush3.bf16.msra.mxu1 %v1307_v18  ;;  %1161 = vmatprep.subr.bf16.mxu0 %v1549_v4 }
  0x8f   :  { %1181 = vmatprep.subr.bf16.mxu1 %v1549_v4 }
  0x91   :  { %1162 = vmatpush3.bf16.msra.mxu0 %v1308_v19 }
  0x92   :  { %1182 = vmatpush3.bf16.msra.mxu1 %v1309_v20  ;;  %1163 = vmatprep.subr.bf16.mxu0 %v1549_v4 }
  0x93   :  { %1183 = vmatprep.subr.bf16.mxu1 %v1549_v4 }
  0x95   :  { %1164 = vmatpush3.bf16.msra.mxu0 %v1310_v21 }
  0x96   :  { %1184 = vmatpush3.bf16.msra.mxu1 %v1311_v22  ;;  %1165 = vmatprep.subr.bf16.mxu0 %v1549_v4 }
  0x97   :  { %1185 = vmatprep.subr.bf16.mxu1 %v1549_v4 }
  0x99   :  { %1166 = vmatpush3.bf16.msra.mxu0 %v1312_v23 }
  0x9a   :  { %1186 = vmatpush3.bf16.msra.mxu1 %v1313_v24  ;;  %1167 = vmatprep.subr.bf16.mxu0 %v1549_v4 }
  0x9b   :  { %1187 = vmatprep.subr.bf16.mxu1 %v1549_v4 }
  0x9d   :  { %1168 = vmatpush3.bf16.msra.mxu0 %v1314_v25 }
  0x9e   :  { %1188 = vmatpush3.bf16.msra.mxu1 %v1315_v26  ;;  %1193 = vmatprep.subr.bf16.mxu0 %v1549_v4 }
  0x9f   :  { %1213 = vmatprep.subr.bf16.mxu1 %v1549_v4 }
 0x10d   :  { %v124_v6 = vpop.xlane.xlu0 %123 }
 0x10e   :  { %v128_v7 = vmul.f32 0.0078125, %v124_v6 }
 0x110   :  { %v130_v8 = vsub.f32 %v119_v0, %v128_v7 }
 0x111   :  { %v126_v9 = vpop.xlane.xlu0 %125 }
 0x112   :  { %v129_v10 = vmul.f32 0.0078125, %v126_v9  ;;  %v132_v11 = vmul.f32 %v130_v8, %v130_v8 }
 0x114   :  { %v131_v12 = vsub.f32 %v120_v1, %v129_v10  ;;  %134 = vadd.xlane.f32.xlu1 %v132_v11 }
 0x116   :  { %v133_v13 = vmul.f32 %v131_v12, %v131_v12 }
 0x118   :  { %136 = vadd.xlane.f32.xlu1 %v133_v13 }
 0x1a1   :  { %v135_v27 = vpop.xlane.xlu1 %134 }
 0x1a2   :  { %v138_v28 = vmul.f32 0.0078125, %v135_v27 }
 0x1a4   :  { %v140_v29 = vadd.f32 1e-05, %v138_v28 }
 0x1a5   :  { %v137_v30 = vpop.xlane.xlu1 %136 }
 0x1a6   :  { %1332 = vrsqrt.f32 %v140_v29  ;;  %v139_v31 = vmul.f32 0.0078125, %v137_v30 }
 0x1a8   :  { %v141_v32 = vadd.f32 1e-05, %v139_v31 }
 0x1aa   :  { %1334 = vrsqrt.f32 %v141_v32 }
 0x1b0   :  { %v1333_v33 = vpop.eup %1332 }
 0x1b1   :  { %v144_v34 = vmul.f32 %v1333_v33, %v130_v8 }
 0x1b3   :  { %v152_v38 = vmul.f32 %v1059_v35, %v144_v34 }
 0x1b4   :  { %v1335_v36 = vpop.eup %1334 }
 0x1b5   :  { %v145_v37 = vmul.f32 %v1335_v36, %v131_v12  ;;  %v160_v41 = vadd.f32 %v1060_v39, %v152_v38 }
 0x1b7   :  { %v153_v40 = vmul.f32 %v1059_v35, %v145_v37 }
 0x1b9   :  { %v161_v42 = vadd.f32 %v1060_v39, %v153_v40 }
 0x1bb   :  { %v162_v44 = vpack.c.bf16 %v161_v42, %v160_v41 }
 0x1bd   :  { %1170 = vmatmul.mubr.bf16.vlgmr.msra.gmra.mrb[0].mxu0 %v162_v44  ;;  %1190 = vmatmul.mubr.bf16.vlgmr.msra.gmra.mrb[0].mxu1 %v162_v44 }
 0x1be   :  { %1194 = vmatpush3.bf16.msra.mxu0 %v1316_v43  ;;  %1209 = vmatprep.mubr.msk.bf16.mxu0 %vm1550_vm0, %v1549_v4 }
 0x1bf   :  { %1195 = vmatprep.subr.bf16.mxu0 %v1549_v4  ;;  %1215 = vmatprep.mubr.msk.bf16.mxu1 %vm1550_vm0, %v1549_v4 }
 0x1c2   :  { %1196 = vmatpush3.bf16.msra.mxu0 %v1317_v45 }
 0x1c3   :  { %1197 = vmatprep.subr.bf16.mxu0 %v1549_v4 }
 0x1c6   :  { %1198 = vmatpush3.bf16.msra.mxu0 %v1318_v46 }
 0x1c7   :  { %1199 = vmatprep.subr.bf16.mxu0 %v1549_v4 }
 0x1ca   :  { %1200 = vmatpush3.bf16.msra.mxu0 %v1319_v47 }
 0x1cb   :  { %1201 = vmatprep.subr.bf16.mxu0 %v1549_v4 }
 0x1ce   :  { %1202 = vmatpush3.bf16.msra.mxu0 %v1320_v48 }
 0x1cf   :  { %1203 = vmatprep.subr.bf16.mxu0 %v1549_v4 }
 0x1d2   :  { %1204 = vmatpush3.bf16.msra.mxu0 %v1321_v49 }
 0x1d3   :  { %1205 = vmatprep.subr.bf16.mxu0 %v1549_v4 }
 0x1d6   :  { %1206 = vmatpush3.bf16.msra.mxu0 %v1322_v50 }
 0x1d7   :  { %1207 = vmatprep.subr.bf16.mxu0 %v1549_v4 }
 0x1da   :  { %1208 = vmatpush3.bf16.msra.mxu0 %v1323_v51 }
 0x1db   :  { %1261 = vmatprep.subr.bf16.mxu0 %v1549_v4 }
 0x1dd   :  { %1210 = vmatmul.mubr.bf16.vlgmr.msra.gmra.mrb[4].mxu0 %v162_v44 }
 0x1de   :  { %1277 = vmatprep.mubr.msk.bf16.mxu0 %vm1550_vm0, %v1549_v4 }
 0x290   :  { %v261_v52 = vpop.f32.mrb[0].mxu0  ;;  %v366_v53 = vpop.f32.mrb[0].mxu1 }
 0x291   :  { %v480_v54 = vpack.c.bf16 %v366_v53, %v366_v53  ;;  %v1171_v55 = vpop.f32.mrb[1].mxu0  ;;  %v1191_v56 = vpop.f32.mrb[1].mxu1  ;;  %v478_v63 = vpack.c.bf16 %v261_v52, %v261_v52 }
 0x292   :  { %v264_v57 = vpop.f32.mrb[2].mxu0  ;;  %v369_v58 = vpop.f32.mrb[2].mxu1 }
 0x293   :  { %v489_v59 = vsel %vm484_vm1, %v480_v54, 0  ;;  %v1172_v60 = vpop.f32.mrb[3].mxu0  ;;  %v1192_v61 = vpop.f32.mrb[3].mxu1  ;;  %v481_v62 = vpack.c.bf16 %v369_v58, %v369_v58  ;;  %v479_v1 = vpack.c.bf16 %v264_v57, %v264_v57 }
 0x294   :  { %1214 = vmatpush3.bf16.xpose.msra.mxu1 %v489_v59 }
 0x295   :  { %1219 = vmatprep.subr.bf16.mxu1 %v1549_v4  ;;  %v535_v0 = vsel %vm484_vm1, %v481_v62, 0 }
 0x29b   :  { %1216 = vmatmul.mubr.msk.bf16.vlgmr.msra.gmra.mrb[4].mxu1 %vm484_vm1, %v478_v63 }
 0x29c   :  { %1220 = vmatpush3.bf16.xpose.msra.mxu1 %v535_v0  ;;  %1221 = vmatprep.mubr.msk.bf16.mxu1 %vm1550_vm0, %v1549_v4 }
 0x29d   :  { %1225 = vmatprep.subr.bf16.mxu1 %v1549_v4 }
 0x2a3   :  { %1222 = vmatmul.mubr.msk.bf16.vlgmr.msra.gmra.mrb[8].mxu1 %vm484_vm1, %v479_v1 }
 0x2a4   :  { %1227 = vmatprep.mubr.msk.bf16.mxu1 %vm1550_vm0, %v1549_v4 }
 0x2b0   :  { %v471_v2 = vpop.f32.mrb[4].mxu0 }
 0x2b1   :  { %v1758_v3 = vpack.c.bf16 %v471_v2, %v471_v2  ;;  %v1211_v5 = vpop.f32.mrb[5].mxu0 }
 0x2b2   :  { %v474_v6 = vpop.f32.mrb[6].mxu0 }
 0x2b3   :  { %v607_v7 = vsel %vm605_vm2, %v1758_v3, 0  ;;  %v1212_v8 = vpop.f32.mrb[7].mxu0  ;;  %v483_v32 = vpack.c.bf16 %v474_v6, %v474_v6 }
 0x2b4   :  { %1226 = vmatpush3.bf16.msra.mxu1 %v607_v7 }
 0x2b5   :  { %1231 = vmatprep.subr.bf16.mxu1 %v1549_v4  ;;  %v653_v35 = vsel %vm605_vm2, %v483_v32, 0 }
 0x36e   :  { %v525_v9 = vpop.f32.mrb[4].mxu1 }
 0x36f   :  { %v1217_v10 = vpop.f32.mrb[5].mxu1  ;;  %v578_v11 = vsel %vm577_vm3, %v525_v9, -inf }
 0x370   :  { %579 = vmax.xlane.f32.xlu0 %v578_v11  ;;  %v528_v12 = vpop.f32.mrb[6].mxu1 }
 0x371   :  { %v1218_v13 = vpop.f32.mrb[7].mxu1 }
 0x376   :  { %v571_v14 = vpop.f32.mrb[8].mxu1 }
 0x377   :  { %v1223_v15 = vpop.f32.mrb[9].mxu1  ;;  %v581_v16 = vsel %vm577_vm3, %v571_v14, -inf }
 0x378   :  { %582 = vmax.xlane.f32.xlu1 %v581_v16  ;;  %v574_v17 = vpop.f32.mrb[10].mxu1 }
 0x379   :  { %v1224_v18 = vpop.f32.mrb[11].mxu1 }
 0x3fd   :  { %v580_v19 = vpop.xlane.xlu0 %579 }
 0x3fe   :  { %v584_v20 = vsub.f32 %v525_v9, %v580_v19 }
 0x400   :  { %v586_v21 = vmul.f32 1.442695, %v584_v20 }
 0x402   :  { %1336 = vpow2.f32 %v586_v21 }
 0x405   :  { %v583_v22 = vpop.xlane.xlu1 %582 }
 0x406   :  { %v585_v23 = vsub.f32 %v571_v14, %v583_v22  ;;  %v1324_v22 = vld [vmem:[#allocation13] sm:$0xff]  }
 0x407   :  { %1262 = vmatpush3.bf16.msra.mxu0 %v1324_v22 }
 0x408   :  { %v588_v24 = vmul.f32 1.442695, %v585_v23  ;;  %v1325_v23 = vld [vmem:[#allocation13 + $0x8] sm:$0xff]   ;;  %1263 = vmatprep.subr.bf16.mxu0 %v1549_v4 }
 0x40a   :  { %1338 = vpow2.f32 %v588_v24  ;;  %v1326_v24 = vld [vmem:[#allocation13 + $0x10] sm:$0xff]  }
 0x40b   :  { %1264 = vmatpush3.bf16.msra.mxu0 %v1325_v23 }
 0x40c   :  { %v1337_v25 = vpop.eup %1336  ;;  %1265 = vmatprep.subr.bf16.mxu0 %v1549_v4 }
 0x40d   :  { %v590_v26 = vsel %vm577_vm3, %v1337_v25, 0.0 }
 0x40e   :  { %591 = vadd.xlane.f32.xlu0 %v590_v26  ;;  %v1328_v26 = vld [vmem:[#allocation13 + $0x20] sm:$0xff]  }
 0x40f   :  { %1266 = vmatpush3.bf16.msra.mxu0 %v1326_v24 }
 0x410   :  { %1267 = vmatprep.subr.bf16.mxu0 %v1549_v4 }
 0x414   :  { %v1339_v27 = vpop.eup %1338 }
 0x415   :  { %v593_v28 = vsel %vm577_vm3, %v1339_v27, 0.0 }
 0x416   :  { %594 = vadd.xlane.f32.xlu1 %v593_v28  ;;  %v1330_v28 = vld [vmem:[#allocation13 + $0x30] sm:$0xff]  }
 0x424   :  { %699 = vrot.lane.b32.xlu0 %v480_v54, %s1540_s1 }
 0x427   :  { %696 = vrot.lane.b32.xlu1 %v478_v63, %s1540_s1 }
 0x42b   :  { %751 = vrot.lane.b32.xlu1 %v481_v62, %s1540_s1 }
 0x42f   :  { %748 = vrot.lane.b32.xlu1 %v479_v1, %s1540_s1 }
 0x49b   :  { %v592_v29 = vpop.xlane.xlu0 %591 }
 0x49c   :  { %1340 = vrcp.f32 %v592_v29  ;;  %v1331_v29 = vld [vmem:[#allocation13 + $0x38] sm:$0xff]  }
 0x49f   :  { %v700_v38 = vpop.permute.xlu0 %699 }
 0x4a0   :  { %v705_v41 = vsel %vm484_vm1, %v700_v38, 0 }
 0x4a3   :  { %v595_v30 = vpop.xlane.xlu1 %594 }
 0x4a4   :  { %1342 = vrcp.f32 %v595_v30 }
 0x4a6   :  { %v1341_v31 = vpop.eup %1340 }
 0x4a7   :  { %v598_v33 = vmul.f32 %v1341_v31, %v1337_v25  ;;  %v697_v40 = vpop.permute.xlu1 %696  ;;  %v1327_v25 = vld [vmem:[#allocation13 + $0x18] sm:$0xff]  }
 0x4a8   :  { %1268 = vmatpush3.bf16.msra.mxu0 %v1327_v25 }
 0x4a9   :  { %v600_v34 = vpack.c.bf16 %v598_v33, %v598_v33  ;;  %1269 = vmatprep.subr.bf16.mxu0 %v1549_v4 }
 0x4ab   :  { %1228 = vmatmul.mubr.msk.bf16.vlgmr.msra.gmra.mrb[12].mxu1 %vm577_vm3, %v600_v34  ;;  %v752_v42 = vpop.permute.xlu1 %751 }
 0x4ac   :  { %1232 = vmatpush3.bf16.msra.mxu1 %v653_v35  ;;  %1233 = vmatprep.mubr.msk.bf16.mxu1 %vm1550_vm0, %v1549_v4  ;;  %v757_v43 = vsel %vm484_vm1, %v752_v42, 0 }
 0x4ad   :  { %1237 = vmatprep.subr.bf16.mxu1 %v1549_v4  ;;  %1270 = vmatpush3.bf16.msra.mxu0 %v1328_v26 }
 0x4ae   :  { %v1343_v36 = vpop.eup %1342  ;;  %1271 = vmatprep.subr.bf16.mxu0 %v1549_v4 }
 0x4af   :  { %v599_v37 = vmul.f32 %v1343_v36, %v1339_v27  ;;  %v749_v44 = vpop.permute.xlu1 %748  ;;  %v1329_v27 = vld [vmem:[#allocation13 + $0x28] sm:$0xff]  }
 0x4b1   :  { %v601_v39 = vpack.c.bf16 %v599_v37, %v599_v37  ;;  %1272 = vmatpush3.bf16.msra.mxu0 %v1329_v27 }
 0x4b2   :  { %1273 = vmatprep.subr.bf16.mxu0 %v1549_v4 }
 0x4b3   :  { %1234 = vmatmul.mubr.msk.bf16.vlgmr.msra.gmra.mrb[16].mxu1 %vm577_vm3, %v601_v39 }
 0x4b4   :  { %1239 = vmatprep.mubr.msk.bf16.mxu1 %vm1550_vm0, %v1549_v4 }
 0x4b5   :  { %1238 = vmatpush3.bf16.xpose.msra.mxu1 %v705_v41  ;;  %1274 = vmatpush3.bf16.msra.mxu0 %v1330_v28 }
 0x4b6   :  { %1243 = vmatprep.subr.bf16.mxu1 %v1549_v4  ;;  %1275 = vmatprep.subr.bf16.mxu0 %v1549_v4 }
 0x4b9   :  { %1276 = vmatpush3.bf16.msra.mxu0 %v1331_v29 }
 0x4bc   :  { %1240 = vmatmul.mubr.msk.bf16.vlgmr.msra.gmra.mrb[20].mxu1 %vm484_vm1, %v697_v40 }
 0x4bd   :  { %1244 = vmatpush3.bf16.xpose.msra.mxu1 %v757_v43  ;;  %1245 = vmatprep.mubr.msk.bf16.mxu1 %vm1550_vm0, %v1549_v4 }
 0x4be   :  { %1249 = vmatprep.subr.bf16.mxu1 %v1549_v4 }
 0x4c4   :  { %1246 = vmatmul.mubr.msk.bf16.vlgmr.msra.gmra.mrb[24].mxu1 %vm484_vm1, %v749_v44 }
 0x4c5   :  { %1251 = vmatprep.mubr.msk.bf16.mxu1 %vm1550_vm0, %v1549_v4 }
 0x57e   :  { %v1789_v45 = vpop.f32.mrb[12].mxu1 }
 0x57f   :  { %v1229_v46 = vpop.f32.mrb[13].mxu1 }
 0x580   :  { %v646_v47 = vpop.f32.mrb[14].mxu1 }
 0x581   :  { %v1230_v48 = vpop.f32.mrb[15].mxu1 }
 0x586   :  { %v1791_v49 = vpop.f32.mrb[16].mxu1 }
 0x587   :  { %v1235_v50 = vpop.f32.mrb[17].mxu1 }
 0x588   :  { %v692_v51 = vpop.f32.mrb[18].mxu1 }
 0x589   :  { %v1236_v52 = vpop.f32.mrb[19].mxu1 }
 0x58f   :  { %v741_v53 = vpop.f32.mrb[20].mxu1 }
 0x590   :  { %v1241_v54 = vpop.f32.mrb[21].mxu1  ;;  %v799_v55 = vsel %vm577_vm3, %v741_v53, -inf }
 0x591   :  { %800 = vmax.xlane.f32.xlu0 %v799_v55  ;;  %v744_v56 = vpop.f32.mrb[22].mxu1 }
 0x592   :  { %v1242_v57 = vpop.f32.mrb[23].mxu1 }
 0x597   :  { %v793_v58 = vpop.f32.mrb[24].mxu1 }
 0x598   :  { %v1247_v59 = vpop.f32.mrb[25].mxu1  ;;  %v802_v60 = vsel %vm577_vm3, %v793_v58, -inf }
 0x599   :  { %803 = vmax.xlane.f32.xlu1 %v802_v60  ;;  %v796_v61 = vpop.f32.mrb[26].mxu1 }
 0x59a   :  { %v1248_v62 = vpop.f32.mrb[27].mxu1 }
 0x5aa   :  { %873 = vrot.lane.b32.xlu1 %v483_v32, %s1540_s1 }
 0x61e   :  { %v801_v63 = vpop.xlane.xlu0 %800 }
 0x61f   :  { %v805_v0 = vsub.f32 %v741_v53, %v801_v63 }
 0x621   :  { %v807_v1 = vmul.f32 1.442695, %v805_v0 }
 0x623   :  { %1344 = vpow2.f32 %v807_v1 }
 0x626   :  { %v804_v2 = vpop.xlane.xlu1 %803 }
 0x627   :  { %v806_v5 = vsub.f32 %v793_v58, %v804_v2 }
 0x629   :  { %v809_v6 = vmul.f32 1.442695, %v806_v5 }
 0x62a   :  { %v874_v17 = vpop.permute.xlu1 %873 }
 0x62b   :  { %1346 = vpow2.f32 %v809_v6  ;;  %v879_v19 = vsel %vm605_vm2, %v874_v17, 0 }
 0x62d   :  { %v1345_v7 = vpop.eup %1344 }
 0x62e   :  { %v811_v8 = vsel %vm577_vm3, %v1345_v7, 0.0 }
 0x62f   :  { %812 = vadd.xlane.f32.xlu0 %v811_v8 }
 0x635   :  { %v1347_v9 = vpop.eup %1346 }
 0x636   :  { %v814_v10 = vsel %vm577_vm3, %v1347_v9, 0.0 }
 0x637   :  { %815 = vadd.xlane.f32.xlu0 %v814_v10 }
 0x64d   :  { %824 = vrot.lane.b32.xlu0 %v1758_v3, %s1540_s1 }
 0x6bc   :  { %v813_v11 = vpop.xlane.xlu0 %812 }
 0x6bd   :  { %1348 = vrcp.f32 %v813_v11 }
 0x6c4   :  { %v816_v12 = vpop.xlane.xlu0 %815 }
 0x6c5   :  { %1350 = vrcp.f32 %v816_v12 }
 0x6c7   :  { %v1349_v13 = vpop.eup %1348 }
 0x6c8   :  { %v819_v14 = vmul.f32 %v1349_v13, %v1345_v7  ;;  %v825_v15 = vpop.permute.xlu0 %824 }
 0x6c9   :  { %v830_v16 = vsel %vm605_vm2, %v825_v15, 0 }
 0x6ca   :  { %1250 = vmatpush3.bf16.msra.mxu1 %v830_v16  ;;  %v821_v18 = vpack.c.bf16 %v819_v14, %v819_v14 }
 0x6cb   :  { %1255 = vmatprep.subr.bf16.mxu1 %v1549_v4 }
 0x6cd   :  { %1252 = vmatmul.mubr.msk.bf16.vlgmr.msra.gmra.mrb[28].mxu1 %vm577_vm3, %v821_v18 }
 0x6ce   :  { %1256 = vmatpush3.bf16.msra.mxu1 %v879_v19  ;;  %1257 = vmatprep.mubr.msk.bf16.mxu1 %vm1550_vm0, %v1549_v4 }
 0x6cf   :  { %v1351_v3 = vpop.eup %1350 }
 0x6d0   :  { %v820_v20 = vmul.f32 %v1351_v3, %v1347_v9 }
 0x6d2   :  { %v822_v21 = vpack.c.bf16 %v820_v20, %v820_v20 }
 0x6d5   :  { %1258 = vmatmul.mubr.msk.bf16.vlgmr.msra.gmra.mrb[32].mxu1 %vm577_vm3, %v822_v21 }
 0x7a0   :  { %v866_v30 = vpop.f32.mrb[28].mxu1 }
 0x7a1   :  { %v1253_v31 = vpop.f32.mrb[29].mxu1 }
 0x7a2   :  { %v869_v32 = vpop.f32.mrb[30].mxu1 }
 0x7a3   :  { %v1254_v33 = vpop.f32.mrb[31].mxu1 }
 0x7a8   :  { %v915_v34 = vpop.f32.mrb[32].mxu1 }
 0x7a9   :  { %v1295_v35 = vpack.i.bf16 %v915_v34, %v866_v30  ;;  %v1259_v36 = vpop.f32.mrb[33].mxu1 }
 0x7aa   :  { %v918_v37 = vpop.f32.mrb[34].mxu1 }
 0x7ab   :  { %1296 = vrot.lane.b32.xlu1 %v1295_v35, %s1540_s1  ;;  %v1260_v38 = vpop.f32.mrb[35].mxu1  ;;  %s1506_s1 = scalar_lea.vmem %s1045_s24, 256 }
 0x7ac   :  { %p1507_p0 = scmp.ne.s32.totalorder %s1045_s24, %s1506_s1  ;;  %p1512_p2 = scmp.lt.s32.totalorder %s1506_s1, %s1506_s1 }
 0x7ae   :  { %p1513_p3 = por %p1512_p2, %p1511_p1 }
 0x7b0   :  { %p1514_p4 = pnand %p1513_p3, %p1507_p0 }
 0x81d   :  { %v1297_v39 = vpop.permute.xlu1 %1296 }
 0x81e   :  { %v1299_v40 = vunpack.i.h.bf16 %v1297_v39  ;;  %v1298_v41 = vunpack.i.l.bf16 %v1297_v39 }
 0x820   :  { %v930_v42 = vsel %vm484_vm1, %v1791_v49, %v1299_v40  ;;  %v929_v4 = vsel %vm484_vm1, %v1789_v45, %v1298_v41 }
 0x821   :  { %v931_v43 = vpack.c.bf16 %v930_v42, %v929_v4 }
 0x823   :  { %1278 = vmatmul.mubr.bf16.vlgmr.msra.gmra.mrb[8].mxu0 %v931_v43 }
 0x8f6   :  { %v1030_v44 = vpop.f32.mrb[8].mxu0 }
 0x8f7   :  { %1037 = vst [vmem:[#allocation14] sm:$0xff] %v1030_v44  ;;  %v1279_v46 = vpop.f32.mrb[9].mxu0 }
 0x8f8   :  { %v1033_v47 = vpop.f32.mrb[10].mxu0 }
 0x8f9   :  { %1038 = vst [vmem:[#allocation14 + $0x8] sm:$0xff] %v1033_v47  ;;  %v1280_v48 = vpop.f32.mrb[11].mxu0 }
 0x8fa   :  { %1517 = shalt.err (!%p1514_p4)
}
 0x8fb   :  { %s1518_s18 = scalar_lea.hbm %s1841_s7, 256 }
 0x8fc   :  { %p1519_p5 = scmp.ne.s32.totalorder %s1841_s7, %s1518_s18  ;;  %p1522_p6 = scmp.lt.u32.totalorder %s1518_s18, %s1841_s7 }
 0x8fe   :  { %p1524_p7 = pnand %p1522_p6, %p1519_p5 }
 0x900   :  { %1527 = shalt.err (!%p1524_p7)
}
 0x901   :  { %1050 = dma.vmem_to_hbm [thread:$0]  %s1045_s24, 256, %s1841_s7, [#allocation4], %s1544_s5, %s1544_s5, %s1545_s26  }
 0x902   :  { %1536 = dma.done.wait [#allocation4], 256  }
 0x903   :  { %1537 = vsyncadd [#allocation4], 4294967040 }
 0x904   :  { %1054 = vsyncpa [#allocation3], 1 }
 0x905   :  { %1055 = vsyncpa [#allocation6], 1 }
 0x906   :  { %1056 = vsyncpa [#allocation9], 1 }
 0x907   :  { %1057 = vsyncpa [#allocation12], 1 }
 0x908   :  { %1058 = vsyncpa [#allocation4], 1 }

</bundles_post_ra>
